<compile_context>
chip_gen: v7x
topology: tpu7x:2x2x1
jax: 0.10.0
libtpu: 0.0.40
codegen_flags: <defaults>
</compile_context>

<pallas_src>
import jax
import jax.numpy as jnp
from jax.experimental import pallas as pl
from jax.experimental.pallas import tpu as pltpu

# ------------------------- config (small, module-consistent) -------------------------
B = 2
IN_CH = 4
OUT_CH = 10
SPATIAL = 16
KSIZE = 3
HIDDEN = 32            # hidden_sizes = [32]; base class applies no gconv layers after lifting
NUM_GROUP_ELEM = 4     # C4 rotations sampled by the continuous kernel
CK_HIDDEN = 32         # width of the continuous-kernel MLP that generates filter values
HEAD_HIDDEN = 256
BN_EPS = 1e-5
HEAD_OUT_PAD = 128     # lane-dense padded width of the final linear output


# ------------------------------- fused Pallas kernel ---------------------------------

def _fused_kernel(p_ref, wl_ref, w1_ref, bns_ref, bnb_ref, w2_ref, b2_ref, o_ref):
    """One batch element per grid step: lifting conv -> amax(G,H,W) -> classifier head."""
    patches = p_ref[0]                                                       # [H*W, Cin*k*k]

    # Lifting group-conv as an im2col matmul (MXU). Output lane j = g*HIDDEN + c.
    y = jnp.dot(patches, wl_ref[...], preferred_element_type=jnp.float32)    # [H*W, G*hidden]

    # amax over (H, W): cross-sublane max, lane axis stays dense at 128.
    pooled = jnp.max(y, axis=0, keepdims=True)                               # [1, G*hidden]

    # amax over G: collapse the NUM_GROUP_ELEM banks inside the 128-lane axis with
    # XLU rolls + VPU maximum; lanes [0, HIDDEN) then hold max over all groups.
    m = pooled
    for g in range(1, NUM_GROUP_ELEM):
        m = jnp.maximum(m, pltpu.roll(pooled, shift=g * HIDDEN, axis=1))
    feat = m[:, :HIDDEN]                                                     # [1, hidden]

    # Head: Linear(no bias) -> BatchNorm1d(eval) -> ReLU -> Dropout(eval=id) -> Linear.
    h = jnp.dot(feat, w1_ref[...], preferred_element_type=jnp.float32)       # [1, 256]
    h = h * bns_ref[...] + bnb_ref[...]
    h = jnp.maximum(h, 0.0)
    o = jnp.dot(h, w2_ref[...], preferred_element_type=jnp.float32) + b2_ref[...]  # [1, 128]
    o_ref[0] = o.astype(o_ref.dtype)


def ckgcnn_fused_pallas(patches, w_lift, w1, bn_scale, bn_shift, w2_pad, b2_pad):
    b, hw, ckk = patches.shape
    gh = w_lift.shape[1]
    return pl.pallas_call(
        _fused_kernel,
        out_shape=jax.ShapeDtypeStruct((b, 1, HEAD_OUT_PAD), jnp.float32),
        grid=(b,),
        in_specs=[
            pl.BlockSpec((1, hw, ckk), lambda i: (i, 0, 0)),      # per-batch patches
            pl.BlockSpec((ckk, gh), lambda i: (0, 0)),            # lifting filters (invariant)
            pl.BlockSpec(w1.shape, lambda i: (0, 0)),
            pl.BlockSpec(bn_scale.shape, lambda i: (0, 0)),
            pl.BlockSpec(bn_shift.shape, lambda i: (0, 0)),
            pl.BlockSpec(w2_pad.shape, lambda i: (0, 0)),
            pl.BlockSpec(b2_pad.shape, lambda i: (0, 0)),
        ],
        out_specs=pl.BlockSpec((1, 1, HEAD_OUT_PAD), lambda i: (i, 0, 0)),
        compiler_params=pltpu.CompilerParams(dimension_semantics=("parallel",)),
    )(patches, w_lift, w1, bn_scale, bn_shift, w2_pad, b2_pad)


# ------------------------- parameter setup (plain-JAX glue) ---------------------------

def make_lifting_weights(key):
    """Continuous-kernel lifting filters: a small SIREN-like MLP maps rotated 2D kernel
    coordinates to filter values, one filter bank per C4 group element.
    Returns W of shape [Cin*k*k, G*hidden] (column index = g*hidden + c) and grid_H."""
    k1, k2 = jax.random.split(key)
    w_in = jax.random.normal(k1, (2, CK_HIDDEN), dtype=jnp.float32)
    w_out = jax.random.normal(k2, (CK_HIDDEN, HIDDEN * IN_CH), dtype=jnp.float32) / jnp.sqrt(CK_HIDDEN)

    lin = jnp.linspace(-1.0, 1.0, KSIZE)
    yy, xx = jnp.meshgrid(lin, lin, indexing="ij")
    coords = jnp.stack([xx.ravel(), yy.ravel()], axis=-1)                  # [k*k, 2]
    grid_H = jnp.arange(NUM_GROUP_ELEM) * (2.0 * jnp.pi / NUM_GROUP_ELEM)  # group elements

    def one_group(theta):
        c, s = jnp.cos(theta), jnp.sin(theta)
        rot = jnp.array([[c, s], [-s, c]], dtype=jnp.float32)
        rc = coords @ rot                                  # rotated kernel coordinates
        h = jnp.sin(3.0 * (rc @ w_in))                     # CK MLP
        w = h @ w_out                                      # [k*k, hidden*Cin]
        return w.reshape(KSIZE * KSIZE, HIDDEN, IN_CH)

    w_g = jax.vmap(one_group)(grid_H)                      # [G, k*k, hidden, Cin]
    w_g = w_g.transpose(0, 2, 3, 1)                        # [G, hidden, Cin, k*k]
    w_flat = w_g.reshape(NUM_GROUP_ELEM, HIDDEN, IN_CH * KSIZE * KSIZE)
    w_flat = w_flat.transpose(2, 0, 1).reshape(IN_CH * KSIZE * KSIZE,
                                               NUM_GROUP_ELEM * HIDDEN)
    return w_flat, grid_H


def init_params(key):
    k_lift, k_w1, k_w2, k_b2 = jax.random.split(key, 4)
    lifting_w, grid_H = make_lifting_weights(k_lift)

    w1 = jax.random.normal(k_w1, (HIDDEN, HEAD_HIDDEN), dtype=jnp.float32) / jnp.sqrt(HIDDEN)
    # BatchNorm1d(256) eval-mode with fresh (init) stats: mean=0, var=1, gamma=1, beta=0.
    gamma = jnp.ones((HEAD_HIDDEN,), jnp.float32)
    beta = jnp.zeros((HEAD_HIDDEN,), jnp.float32)
    running_mean = jnp.zeros((HEAD_HIDDEN,), jnp.float32)
    running_var = jnp.ones((HEAD_HIDDEN,), jnp.float32)
    bn_scale = (gamma / jnp.sqrt(running_var + BN_EPS)).reshape(1, HEAD_HIDDEN)
    bn_shift = (beta - running_mean * bn_scale[0]).reshape(1, HEAD_HIDDEN)

    w2 = jax.random.normal(k_w2, (HEAD_HIDDEN, OUT_CH), dtype=jnp.float32) / jnp.sqrt(HEAD_HIDDEN)
    b2 = 0.01 * jax.random.normal(k_b2, (1, OUT_CH), dtype=jnp.float32)

    # Zero-pad the final linear to a 128-lane-dense output slab (sliced back in wrapper).
    w2_pad = jnp.zeros((HEAD_HIDDEN, HEAD_OUT_PAD), jnp.float32).at[:, :OUT_CH].set(w2)
    b2_pad = jnp.zeros((1, HEAD_OUT_PAD), jnp.float32).at[:, :OUT_CH].set(b2)

    return dict(lifting_w=lifting_w, grid_H=grid_H, w1=w1,
                bn_scale=bn_scale, bn_shift=bn_shift,
                w2_pad=w2_pad, b2_pad=b2_pad)


def im2col(x):
    """3x3, stride 1, padding 1 (same) patch extraction; feature order (Cin, kh*kw).
    Kept in the jit-fused XLA wrapper: input is ~8 KiB, so in-kernel extraction (Cin=4
    lanes) would be lane-sparse for no measurable gain at this size."""
    b, c, h, w = x.shape
    pad = KSIZE // 2
    xp = jnp.pad(x, ((0, 0), (0, 0), (pad, pad), (pad, pad)))
    cols = []
    for dh in range(KSIZE):
        for dw in range(KSIZE):
            cols.append(xp[:, :, dh:dh + h, dw:dw + w])
    p = jnp.stack(cols, axis=2)               # [B, Cin, k*k, H, W]
    p = p.transpose(0, 3, 4, 1, 2)            # [B, H, W, Cin, k*k]
    return p.reshape(b, h * w, c * KSIZE * KSIZE)


# ---------------------------------- forward -------------------------------------------

@jax.jit
def ckgcnn_forward(x, params):
    b, c, h, w = x.shape
    # x, grid_H = self.lifting(x) ; self.layers is empty ; amax over (G,H,W) ; head.
    patches = im2col(x)                                               # [B, H*W, Cin*k*k]
    out_pad = ckgcnn_fused_pallas(patches, params["lifting_w"], params["w1"],
                                  params["bn_scale"], params["bn_shift"],
                                  params["w2_pad"], params["b2_pad"])  # [B, 1, 128]
    return out_pad[:, 0, :OUT_CH]                                      # [B, out_channels]


if __name__ == "__main__":
    key = jax.random.PRNGKey(0)
    kx, kp = jax.random.split(key)
    x = jax.random.normal(kx, (B, IN_CH, SPATIAL, SPATIAL), dtype=jnp.float32)
    params = init_params(kp)

    out = ckgcnn_forward(x, params)
    jax.block_until_ready(out)
    assert out.shape == (B, OUT_CH), out.shape
    assert bool(jnp.all(jnp.isfinite(out)))
    print("KERNEL_OK")
</pallas_src>

<mosaic_0001>
module attributes {stable_mosaic.version = 11 : i64} {
  func.func @_fused_kernel(%arg0: i32, %arg1: memref<1x256x36xf32, #tpu.memory_space<vmem>>, %arg2: memref<36x128xf32, #tpu.memory_space<vmem>>, %arg3: memref<32x256xf32, #tpu.memory_space<vmem>>, %arg4: memref<1x256xf32, #tpu.memory_space<vmem>>, %arg5: memref<1x256xf32, #tpu.memory_space<vmem>>, %arg6: memref<256x128xf32, #tpu.memory_space<vmem>>, %arg7: memref<1x128xf32, #tpu.memory_space<vmem>>, %arg8: memref<1x1x128xf32, #tpu.memory_space<vmem>>) attributes {dimension_semantics = [#tpu.dimension_semantics<parallel>], iteration_bounds = array<i64: 2>, scalar_prefetch = 0 : i64, scratch_operands = 0 : i64, tpu.core_type = #tpu.core_type<tc>, window_params = [{transform_indices = @transform_0, window_bounds = array<i64: 1, 256, 36>}, {pipeline_mode = #tpu.pipeline_mode<synchronous>, transform_indices = @transform_1, window_bounds = array<i64: 36, 128>}, {pipeline_mode = #tpu.pipeline_mode<synchronous>, transform_indices = @transform_2, window_bounds = array<i64: 32, 256>}, {pipeline_mode = #tpu.pipeline_mode<synchronous>, transform_indices = @transform_3, window_bounds = array<i64: 1, 256>}, {pipeline_mode = #tpu.pipeline_mode<synchronous>, transform_indices = @transform_4, window_bounds = array<i64: 1, 256>}, {pipeline_mode = #tpu.pipeline_mode<synchronous>, transform_indices = @transform_5, window_bounds = array<i64: 256, 128>}, {pipeline_mode = #tpu.pipeline_mode<synchronous>, transform_indices = @transform_6, window_bounds = array<i64: 1, 128>}, {transform_indices = @transform_7, window_bounds = array<i64: 1, 1, 128>}]} {
    %c0 = arith.constant 0 : index
    %c0_0 = arith.constant 0 : index
    %c0_1 = arith.constant 0 : index
    %0 = vector.load %arg1[%c0, %c0_0, %c0_1] : memref<1x256x36xf32, #tpu.memory_space<vmem>>, vector<1x256x36xf32>
    %1 = vector.shape_cast %0 : vector<1x256x36xf32> to vector<256x36xf32>
    %c0_2 = arith.constant 0 : index
    %c0_3 = arith.constant 0 : index
    %2 = vector.load %arg2[%c0_2, %c0_3] : memref<36x128xf32, #tpu.memory_space<vmem>>, vector<36x128xf32>
    %cst = arith.constant dense<0.000000e+00> : vector<256x128xf32>
    %3 = tpu.matmul %1, %2, %cst {dimension_numbers = #tpu.dot_dimension_numbers<[1], [0], [0], [1], [0, 0, 1, 1], [], []>} : vector<256x36xf32>, vector<36x128xf32>, vector<256x128xf32> -> vector<256x128xf32>
    %cst_4 = arith.constant dense<0xFF800000> : vector<128xf32>
    %4 = vector.multi_reduction <maximumf>, %3, %cst_4 [0] : vector<256x128xf32> to vector<128xf32>
    %5 = vector.shape_cast %4 : vector<128xf32> to vector<1x128xf32>
    %c32_i32 = arith.constant 32 : i32
    %6 = tpu.dynamic_rotate %5 by %c32_i32 dim 1 : vector<1x128xf32>, i32 -> vector<1x128xf32>
    %7 = arith.maximumf %5, %6 : vector<1x128xf32>
    %c64_i32 = arith.constant 64 : i32
    %8 = tpu.dynamic_rotate %5 by %c64_i32 dim 1 : vector<1x128xf32>, i32 -> vector<1x128xf32>
    %9 = arith.maximumf %7, %8 : vector<1x128xf32>
    %c96_i32 = arith.constant 96 : i32
    %10 = tpu.dynamic_rotate %5 by %c96_i32 dim 1 : vector<1x128xf32>, i32 -> vector<1x128xf32>
    %11 = arith.maximumf %9, %10 : vector<1x128xf32>
    %12 = vector.extract_strided_slice %11 {offsets = [0, 0], sizes = [1, 32], strides = [1, 1]} : vector<1x128xf32> to vector<1x32xf32>
    %c0_5 = arith.constant 0 : index
    %c0_6 = arith.constant 0 : index
    %13 = vector.load %arg3[%c0_5, %c0_6] : memref<32x256xf32, #tpu.memory_space<vmem>>, vector<32x256xf32>
    %cst_7 = arith.constant dense<0.000000e+00> : vector<1x256xf32>
    %14 = tpu.matmul %12, %13, %cst_7 {dimension_numbers = #tpu.dot_dimension_numbers<[1], [0], [0], [1], [0, 0, 1, 1], [], []>} : vector<1x32xf32>, vector<32x256xf32>, vector<1x256xf32> -> vector<1x256xf32>
    %c0_8 = arith.constant 0 : index
    %c0_9 = arith.constant 0 : index
    %15 = vector.load %arg4[%c0_8, %c0_9] : memref<1x256xf32, #tpu.memory_space<vmem>>, vector<1x256xf32>
    %16 = arith.mulf %14, %15 : vector<1x256xf32>
    %c0_10 = arith.constant 0 : index
    %c0_11 = arith.constant 0 : index
    %17 = vector.load %arg5[%c0_10, %c0_11] : memref<1x256xf32, #tpu.memory_space<vmem>>, vector<1x256xf32>
    %18 = arith.addf %16, %17 : vector<1x256xf32>
    %cst_12 = arith.constant 0.000000e+00 : f32
    %19 = vector.broadcast %cst_12 : f32 to vector<1x256xf32>
    %20 = arith.maximumf %18, %19 : vector<1x256xf32>
    %c0_13 = arith.constant 0 : index
    %c0_14 = arith.constant 0 : index
    %21 = vector.load %arg6[%c0_13, %c0_14] : memref<256x128xf32, #tpu.memory_space<vmem>>, vector<256x128xf32>
    %cst_15 = arith.constant dense<0.000000e+00> : vector<1x128xf32>
    %22 = tpu.matmul %20, %21, %cst_15 {dimension_numbers = #tpu.dot_dimension_numbers<[1], [0], [0], [1], [0, 0, 1, 1], [], []>} : vector<1x256xf32>, vector<256x128xf32>, vector<1x128xf32> -> vector<1x128xf32>
    %c0_16 = arith.constant 0 : index
    %c0_17 = arith.constant 0 : index
    %23 = vector.load %arg7[%c0_16, %c0_17] : memref<1x128xf32, #tpu.memory_space<vmem>>, vector<1x128xf32>
    %24 = arith.addf %22, %23 : vector<1x128xf32>
    %c0_18 = arith.constant 0 : index
    %c0_19 = arith.constant 0 : index
    %c0_20 = arith.constant 0 : index
    %25 = vector.load %arg8[%c0_18, %c0_19, %c0_20] : memref<1x1x128xf32, #tpu.memory_space<vmem>>, vector<1x1x128xf32>
    %26 = vector.shape_cast %25 : vector<1x1x128xf32> to vector<1x128xf32>
    %27 = vector.shape_cast %24 : vector<1x128xf32> to vector<1x1x128xf32>
    tpu.vector_store %arg8[%c0_18, %c0_19, %c0_20], %27 {strides = array<i32>} : memref<1x1x128xf32, #tpu.memory_space<vmem>>, vector<1x1x128xf32>,
    return
  }
  func.func @transform_0(%arg0: i32) -> (i32, i32, i32) {
    %c0_i32 = arith.constant 0 : i32
    %c0_i32_0 = arith.constant 0 : i32
    %c0_i32_1 = arith.constant 0 : i32
    return %arg0, %c0_i32, %c0_i32_0 : i32, i32, i32
  }
  func.func @transform_1(%arg0: i32) -> (i32, i32) {
    %c0_i32 = arith.constant 0 : i32
    %c0_i32_0 = arith.constant 0 : i32
    %c0_i32_1 = arith.constant 0 : i32
    return %c0_i32, %c0_i32_0 : i32, i32
  }
  func.func @transform_2(%arg0: i32) -> (i32, i32) {
    %c0_i32 = arith.constant 0 : i32
    %c0_i32_0 = arith.constant 0 : i32
    %c0_i32_1 = arith.constant 0 : i32
    return %c0_i32, %c0_i32_0 : i32, i32
  }
  func.func @transform_3(%arg0: i32) -> (i32, i32) {
    %c0_i32 = arith.constant 0 : i32
    %c0_i32_0 = arith.constant 0 : i32
    %c0_i32_1 = arith.constant 0 : i32
    return %c0_i32, %c0_i32_0 : i32, i32
  }
  func.func @transform_4(%arg0: i32) -> (i32, i32) {
    %c0_i32 = arith.constant 0 : i32
    %c0_i32_0 = arith.constant 0 : i32
    %c0_i32_1 = arith.constant 0 : i32
    return %c0_i32, %c0_i32_0 : i32, i32
  }
  func.func @transform_5(%arg0: i32) -> (i32, i32) {
    %c0_i32 = arith.constant 0 : i32
    %c0_i32_0 = arith.constant 0 : i32
    %c0_i32_1 = arith.constant 0 : i32
    return %c0_i32, %c0_i32_0 : i32, i32
  }
  func.func @transform_6(%arg0: i32) -> (i32, i32) {
    %c0_i32 = arith.constant 0 : i32
    %c0_i32_0 = arith.constant 0 : i32
    %c0_i32_1 = arith.constant 0 : i32
    return %c0_i32, %c0_i32_0 : i32, i32
  }
  func.func @transform_7(%arg0: i32) -> (i32, i32, i32) {
    %c0_i32 = arith.constant 0 : i32
    %c0_i32_0 = arith.constant 0 : i32
    %c0_i32_1 = arith.constant 0 : i32
    return %arg0, %c0_i32, %c0_i32_0 : i32, i32, i32
  }
}

</mosaic_0001>

<bundles_post_ra>
// kernel: ckgcnn_forward.1
= control target key start
LH: loop header
LB: loop body
LE: loop exit
PB: predicated region body
PF: predicated region fallthrough
CT: control target
= control target key end

     0   :  { %12 = vsyncpa [#allocation3], 0  ;;  %s1660_s0 = inlined_call_operand.vmem [shape: f32[2,256,36], index: 0, kind: input, shape index: {}]   ;;  %s1661_s1 = inlined_call_operand.vmem [shape: f32[36,128], index: 1, kind: input, shape index: {}]   ;;  %s1662_s2 = inlined_call_operand.vmem [shape: f32[32,256], index: 2, kind: input, shape index: {}]   ;;  %s1663_s3 = inlined_call_operand.vmem [shape: f32[1,256], index: 3, kind: input, shape index: {}]   ;;  %s1664_s4 = inlined_call_operand.vmem [shape: f32[1,256], index: 4, kind: input, shape index: {}]   ;;  %s1665_s5 = inlined_call_operand.vmem [shape: f32[256,128], index: 5, kind: input, shape index: {}]   ;;  %s1666_s6 = inlined_call_operand.vmem [shape: f32[1,128], index: 6, kind: input, shape index: {}]   ;;  %s1667_s7 = inlined_call_operand.hbm [shape: f32[2,1,128], index: 7, kind: output, shape index: {}]  }
   0x1   :  { %14 = vsyncpa [#allocation3 + $0x1], 0  ;;  %s1350_s24 = smov 0   ;;  %s1352_s25 = smov 0  }
   0x2   :  { %s1354_s26 = smov 0   ;;  %s1356_s27 = smov 0  }
   0x3 LB: > { %s1371_s28 = sadd.s32 4294967295, %s1303_s27   ;;  %s970_s29 = sadd.s32 4294967294, %s1303_s27   ;;  %s1303_s27 = sphi %s1356_s27, %s1673_s27   ;;  %s1299_s26 = sphi %s1354_s26, %s1672_s26   ;;  %s1295_s25 = sphi %s1352_s25, %s1671_s25   ;;  %s1291_s24 = sphi %s1350_s24, %s1670_s24  }
   0x4   : > { %s1375_s30 = sadd.s32 1, %s1303_s27   ;;  %s179_s8 = sadd.s32 1, %s1299_s26 }
   0x5   : > { %s176_s9 = ssub.s32 %s1303_s27, %s1375_s30  ;;  %p189_p0 = scmp.ne.s32.totalorder %s1299_s26, %s1295_s25 }
   0x6   : > { %p177_p1 = scmp.eq.s32.totalorder %s176_s9, 0  ;;  %p190_p2 = scmp.eq.s32.totalorder %s1371_s28, 1 }
   0x7   : > { %p195_p3 = scmp.ne.s32.totalorder %s1295_s25, %s1291_s24  ;;  %p196_p4 = scmp.eq.s32.totalorder %s970_s29, 1 }
   0x8   : > { %s1386_s10 = scalar_select %p177_p1, %s1299_s26, %s179_s8  }
   0x9   : > { %p1388_p5 = por %p190_p2, %p189_p0  ;;  %p1392_p6 = por %p196_p4, %p195_p3 }
   0xa   : > { %p973_p7 = scmp.ge.s32.totalorder %s1303_s27, 1  ;;  %p240_p8 = scmp.lt.s32.totalorder %s1303_s27, 3 }
   0xc   : > { %p241_p9 = pnand %p973_p7, %p240_p8 }
   0xd   : > { %v308_v0 = vld [vmem:[%s1661_s1] sm:$0xff] (!%p241_p9)  ;;  %v309_v1 = vld [vmem:[%s1661_s1 + $0x8] sm:$0xff] (!%p241_p9)  ;;  %v310_v2 = vld [vmem:[%s1661_s1 + $0x10] sm:$0xff] (!%p241_p9)  ;;  %p271_p10 = scmp.lt.s32.totalorder (!%p241_p9), %s1371_s28, 1  ;;  %vm313_vm0 = vcmask (!%p241_p9), 293888   ;;  %vm410_vm1 = vcmask (!%p241_p9), 1043456  }
   0xe   : > { %244 = sbr.rel (%p241_p9) target bundleno = 882 (0x372), region = 48  ;;  %v1144_v3 = vpack.c.bf16 (!%p241_p9), %v309_v1, %v308_v0  ;;  %v311_v4 = vld [vmem:[%s1661_s1 + $0x18] sm:$0xff] (!%p241_p9)  ;;  %v312_v6 = vld [vmem:[%s1661_s1 + $0x20] sm:$0xf] (!%p241_p9)  ;;  %v686_v39 = vld [vmem:[%s1662_s2 + $0x8] sm:$0xff] (!%p241_p9)  ;;  %s1306_s20 = smov (!%p241_p9), 96  }
   0xf   : > { %v1148_v5 = vpack.c.bf16 (!%p241_p9), %v311_v4, %v310_v2  ;;  %v688_v40 = vld [vmem:[%s1662_s2 + $0x18] sm:$0xff] (!%p241_p9)  ;;  %v685_v41 = vld [vmem:[%s1662_s2] sm:$0xff] (!%p241_p9)  ;;  %v687_v43 = vld [vmem:[%s1662_s2 + $0x10] sm:$0xff] (!%p241_p9)  ;;  %vm693_vm2 = vcmask (!%p241_p9), 261120   ;;  %s269_s17 = sand.u32 (!%p241_p9), 1, %s1295_s25  }
  0x10   : > { %1145 = vmatprep.subr.bf16.mxu0 (!%p241_p9), %v1144_v3  ;;  %1192 = vmatprep.subr.bf16.mxu1 (!%p241_p9), %v1144_v3  ;;  %v1152_v42 = vpack.c.bf16 (!%p241_p9), %v688_v40, %v686_v39  ;;  %v1154_v44 = vpack.c.bf16 (!%p241_p9), %v687_v43, %v685_v41  ;;  %s903_s9 = scalar_lea.sflag (!%p241_p9), [#allocation3], %s269_s17 }
  0x11   : > { %1147 = vmatpush3.bf16.msra.mxu0 (!%p241_p9), %v1144_v3  ;;  %1195 = vmatpush3.bf16.msra.mxu1 (!%p241_p9), %v1144_v3 }
  0x12   : > { %1149 = vmatprep.subr.bf16.mxu0 (!%p241_p9), %v1148_v5  ;;  %1193 = vmatprep.subr.bf16.mxu1 (!%p241_p9), %v1148_v5 }
  0x15   : > { %s272_s21 = scalar_select %p271_p10, %s1371_s28, 1  ;;  %1151 = vmatpush3.bf16.msra.mxu0 %v1148_v5  ;;  %1196 = vmatpush3.bf16.msra.mxu1 %v1148_v5 }
  0x16   : > { %1094 = vmatprep.subr.msk.mxu0 %vm410_vm1, %v312_v6  ;;  %1194 = vmatprep.subr.msk.mxu1 %vm410_vm1, %v312_v6 }
  0x17   : > { %s1013_s22 = sshll.u32 %s272_s21, 8  ;;  %s1307_s21 = smov 32  }
  0x18   : > { %s1415_s8 = scalar_lea.vmem %s1660_s0, %s1013_s22  ;;  %s1308_s22 = smov 64  }
  0x19   : > { %v276_v7 = vld [vmem:[%s1415_s8] sm:$0xff]  ;;  %v277_v8 = vld [vmem:[%s1415_s8 + $0x8] sm:$0xff]  ;;  %v278_v9 = vld [vmem:[%s1415_s8 + $0x10] sm:$0xff]  ;;  %1095 = vmatpush3.msk.msra.mxu0 %vm410_vm1, %v312_v6  ;;  %1197 = vmatpush3.msk.msra.mxu1 %vm410_vm1, %v312_v6 }
  0x1a   : > { %1096 = vmatprep.mubr.msk.f32.mxu0 %vm313_vm0, %v276_v7  ;;  %v302_v10 = vld [vmem:[%s1415_s8 + $0xd0] sm:$0xff]  ;;  %v303_v11 = vld [vmem:[%s1415_s8 + $0xd8] sm:$0xff]  ;;  %v304_v13 = vld [vmem:[%s1415_s8 + $0xe0] sm:$0xff]  ;;  %1153 = vmatprep.subr.bf16.mxu1 %v1152_v42 }
  0x1b   : > { %1097 = vmatmul.mubr.msk.f32.vlgmr.msra.gmra.mrb[0].mxu0 %vm313_vm0, %v277_v8  ;;  %v279_v12 = vld [vmem:[%s1415_s8 + $0x18] sm:$0xff]  ;;  %1135 = vmatprep.mubr.msk.f32.mxu1 %vm313_vm0, %v302_v10  ;;  %v280_v14 = vld [vmem:[%s1415_s8 + $0x20] sm:$0xff]  ;;  %v305_v15 = vld [vmem:[%s1415_s8 + $0xe8] sm:$0xff] }
  0x1c   : > { %1099 = vmatprep.mubr.msk.f32.mxu0 %vm313_vm0, %v278_v9  ;;  %1136 = vmatmul.mubr.msk.f32.vlgmr.msra.gmra.mrb[0].mxu1 %vm313_vm0, %v303_v11  ;;  %v306_v16 = vld [vmem:[%s1415_s8 + $0xf0] sm:$0xff]  ;;  %v281_v17 = vld [vmem:[%s1415_s8 + $0x28] sm:$0xff]  ;;  %v307_v19 = vld [vmem:[%s1415_s8 + $0xf8] sm:$0xff] }
  0x1d   : > { %1138 = vmatprep.mubr.msk.f32.mxu1 %vm313_vm0, %v304_v13  ;;  %v282_v18 = vld [vmem:[%s1415_s8 + $0x30] sm:$0xff]  ;;  %v283_v20 = vld [vmem:[%s1415_s8 + $0x38] sm:$0xff]  ;;  %v284_v21 = vld [vmem:[%s1415_s8 + $0x40] sm:$0xff]  ;;  %1155 = vmatpush1.bf16.msra.mxu1 %v1154_v44 }
  0x1e   : > { %v285_v22 = vld [vmem:[%s1415_s8 + $0x48] sm:$0xff]  ;;  %v286_v23 = vld [vmem:[%s1415_s8 + $0x50] sm:$0xff]  ;;  %v287_v24 = vld [vmem:[%s1415_s8 + $0x58] sm:$0xff] }
  0x1f   : > { %1100 = vmatmul.mubr.msk.f32.gmra.mrb[2].mxu0 %vm313_vm0, %v279_v12  ;;  %v288_v25 = vld [vmem:[%s1415_s8 + $0x60] sm:$0xff]  ;;  %v289_v26 = vld [vmem:[%s1415_s8 + $0x68] sm:$0xff]  ;;  %v290_v27 = vld [vmem:[%s1415_s8 + $0x70] sm:$0xff] }
  0x20   : > { %1102 = vmatprep.mubr.msk.f32.mxu0 %vm313_vm0, %v280_v14  ;;  %1139 = vmatmul.mubr.msk.f32.gmra.mrb[2].mxu1 %vm313_vm0, %v305_v15  ;;  %v291_v28 = vld [vmem:[%s1415_s8 + $0x78] sm:$0xff]  ;;  %v292_v29 = vld [vmem:[%s1415_s8 + $0x80] sm:$0xff]  ;;  %v293_v30 = vld [vmem:[%s1415_s8 + $0x88] sm:$0xff] }
  0x21   : > { %1141 = vmatprep.mubr.msk.f32.mxu1 %vm313_vm0, %v306_v16  ;;  %v294_v31 = vld [vmem:[%s1415_s8 + $0x90] sm:$0xff]  ;;  %v295_v32 = vld [vmem:[%s1415_s8 + $0x98] sm:$0xff]  ;;  %v296_v33 = vld [vmem:[%s1415_s8 + $0xa0] sm:$0xff] }
  0x22   : > { %v297_v34 = vld [vmem:[%s1415_s8 + $0xa8] sm:$0xff]  ;;  %v298_v35 = vld [vmem:[%s1415_s8 + $0xb0] sm:$0xff]  ;;  %v299_v36 = vld [vmem:[%s1415_s8 + $0xb8] sm:$0xff] }
  0x23   : > { %1103 = vmatmul.mubr.msk.f32.gmra.mrb[4].mxu0 %vm313_vm0, %v281_v17  ;;  %v300_v37 = vld [vmem:[%s1415_s8 + $0xc0] sm:$0xff]  ;;  %v301_v38 = vld [vmem:[%s1415_s8 + $0xc8] sm:$0xff] }
  0x24   : > { %1105 = vmatprep.mubr.msk.f32.mxu0 %vm313_vm0, %v282_v18  ;;  %1142 = vmatmul.mubr.msk.f32.gmra.mrb[4].mxu1 %vm313_vm0, %v307_v19  ;;  %v690_v44 = vld [vmem:[%s1662_s2 + $0x28] sm:$0xff] }
  0x27   : > { %1106 = vmatmul.mubr.msk.f32.gmra.mrb[6].mxu0 %vm313_vm0, %v283_v20 }
  0x28   : > { %1108 = vmatprep.mubr.msk.f32.mxu0 %vm313_vm0, %v284_v21 }
  0x2b   : > { %1109 = vmatmul.mubr.msk.f32.gmra.mrb[8].mxu0 %vm313_vm0, %v285_v22 }
  0x2c   : > { %1111 = vmatprep.mubr.msk.f32.mxu0 %vm313_vm0, %v286_v23 }
  0x2f   : > { %1112 = vmatmul.mubr.msk.f32.gmra.mrb[10].mxu0 %vm313_vm0, %v287_v24 }
  0x30   : > { %1114 = vmatprep.mubr.msk.f32.mxu0 %vm313_vm0, %v288_v25 }
  0x33   : > { %1115 = vmatmul.mubr.msk.f32.gmra.mrb[12].mxu0 %vm313_vm0, %v289_v26 }
  0x34   : > { %1117 = vmatprep.mubr.msk.f32.mxu0 %vm313_vm0, %v290_v27 }
  0x37   : > { %1118 = vmatmul.mubr.msk.f32.gmra.mrb[14].mxu0 %vm313_vm0, %v291_v28 }
  0x38   : > { %1120 = vmatprep.mubr.msk.f32.mxu0 %vm313_vm0, %v292_v29 }
  0x3b   : > { %1121 = vmatmul.mubr.msk.f32.gmra.mrb[16].mxu0 %vm313_vm0, %v293_v30 }
  0x3c   : > { %1123 = vmatprep.mubr.msk.f32.mxu0 %vm313_vm0, %v294_v31 }
  0x3f   : > { %1124 = vmatmul.mubr.msk.f32.gmra.mrb[18].mxu0 %vm313_vm0, %v295_v32 }
  0x40   : > { %1126 = vmatprep.mubr.msk.f32.mxu0 %vm313_vm0, %v296_v33 }
  0x43   : > { %1127 = vmatmul.mubr.msk.f32.gmra.mrb[20].mxu0 %vm313_vm0, %v297_v34 }
  0x44   : > { %1129 = vmatprep.mubr.msk.f32.mxu0 %vm313_vm0, %v298_v35 }
  0x47   : > { %1130 = vmatmul.mubr.msk.f32.gmra.mrb[22].mxu0 %vm313_vm0, %v299_v36 }
  0x48   : > { %1132 = vmatprep.mubr.msk.f32.mxu0 %vm313_vm0, %v300_v37 }
  0x4b   : > { %1133 = vmatmul.mubr.msk.f32.gmra.mrb[24].mxu0 %vm313_vm0, %v301_v38 }
  0xee   : > { %v1098_v45 = vpop.f32.mrb[0].mxu0 }
  0xef   : > { %v480_v46 = vpop.f32.mrb[1].mxu0  ;;  %v1137_v47 = vpop.f32.mrb[0].mxu1 }
  0xf0   : > { %v610_v48 = vpop.f32.mrb[1].mxu1 }
  0xf2   : > { %v1101_v49 = vpop.f32.mrb[2].mxu0 }
  0xf3   : > { %v490_v50 = vpop.f32.mrb[3].mxu0  ;;  %v1140_v51 = vpop.f32.mrb[2].mxu1 }
  0xf4   : > { %v620_v52 = vpop.f32.mrb[3].mxu1 }
  0xf6   : > { %v1104_v53 = vpop.f32.mrb[4].mxu0 }
  0xf7   : > { %v640_v54 = vmax.f32 %v1098_v45, %v1104_v53  ;;  %v500_v55 = vpop.f32.mrb[5].mxu0  ;;  %v1143_v57 = vpop.f32.mrb[4].mxu1  ;;  %v692_v45 = vld [vmem:[%s1662_s2 + $0x38] sm:$0xff] }
  0xf8   : > { %v639_v56 = vmax.f32 %v480_v46, %v500_v55  ;;  %v630_v58 = vpop.f32.mrb[5].mxu1  ;;  %v689_v46 = vld [vmem:[%s1662_s2 + $0x20] sm:$0xff] }
  0xf9   : > { %v814_v55 = vld [vmem:[%s1665_s5 + $0x80] sm:$0xff] }
  0xfa   : > { %v1107_v59 = vpop.f32.mrb[6].mxu0 }
  0xfb   : > { %v642_v60 = vmax.f32 %v1101_v49, %v1107_v59  ;;  %v510_v61 = vpop.f32.mrb[7].mxu0  ;;  %v691_v49 = vld [vmem:[%s1662_s2 + $0x30] sm:$0xff] }
  0xfc   : > { %v641_v62 = vmax.f32 %v490_v50, %v510_v61  ;;  %v1158_v50 = vpack.c.bf16 %v691_v49, %v689_v46 }
  0xfe   : > { %v1110_v63 = vpop.f32.mrb[8].mxu0 }
  0xff   : > { %v644_v0 = vmax.f32 %v640_v54, %v1110_v63  ;;  %v520_v1 = vpop.f32.mrb[9].mxu0  ;;  %v1305_v54 = vmov 0.0   ;;  %v799_v63 = vld [vmem:[%s1665_s5 + $0x8] sm:$0xff] }
 0x100   : > { %v643_v2 = vmax.f32 %v639_v56, %v520_v1  ;;  %761 = vmatprep.mubr.f32.mxu1 %v1305_v54  ;;  %v815_v56 = vld [vmem:[%s1665_s5 + $0x88] sm:$0xff]  ;;  %v816_v1 = vld [vmem:[%s1665_s5 + $0x90] sm:$0xff] }
 0x102   : > { %v1113_v3 = vpop.f32.mrb[10].mxu0 }
 0x103   : > { %v646_v4 = vmax.f32 %v642_v60, %v1113_v3  ;;  %v530_v5 = vpop.f32.mrb[11].mxu0 }
 0x104   : > { %v645_v6 = vmax.f32 %v641_v62, %v530_v5  ;;  %v798_v62 = vld [vmem:[%s1665_s5] sm:$0xff] }
 0x105   : > { %v1162_v5 = vpack.c.bf16 %v799_v63, %v798_v62 }
 0x106   : > { %v1116_v7 = vpop.f32.mrb[12].mxu0 }
 0x107   : > { %v648_v8 = vmax.f32 %v644_v0, %v1116_v7  ;;  %v540_v9 = vpop.f32.mrb[13].mxu0 }
 0x108   : > { %v647_v10 = vmax.f32 %v643_v2, %v540_v9  ;;  %v817_v2 = vld [vmem:[%s1665_s5 + $0x98] sm:$0xff] }
 0x109   : > { %v1164_v7 = vpack.c.bf16 %v817_v2, %v816_v1  ;;  %v801_v9 = vld [vmem:[%s1665_s5 + $0x18] sm:$0xff]  ;;  %v830_v2 = vld [vmem:[%s1666_s6] sm:$0x1] }
 0x10a   : > { %v1119_v11 = vpop.f32.mrb[14].mxu0 }
 0x10b   : > { %v650_v12 = vmax.f32 %v646_v4, %v1119_v11  ;;  %v550_v13 = vpop.f32.mrb[15].mxu0  ;;  %v819_v11 = vld [vmem:[%s1665_s5 + $0xa8] sm:$0xff] }
 0x10c   : > { %v649_v14 = vmax.f32 %v645_v6, %v550_v13 }
 0x10e   : > { %v1122_v15 = vpop.f32.mrb[16].mxu0 }
 0x10f   : > { %v652_v16 = vmax.f32 %v648_v8, %v1122_v15  ;;  %v560_v17 = vpop.f32.mrb[17].mxu0  ;;  %v800_v8 = vld [vmem:[%s1665_s5 + $0x10] sm:$0xff]  ;;  %v803_v15 = vld [vmem:[%s1665_s5 + $0x28] sm:$0xff] }
 0x110   : > { %v651_v18 = vmax.f32 %v647_v10, %v560_v17  ;;  %v818_v10 = vld [vmem:[%s1665_s5 + $0xa0] sm:$0xff]  ;;  %v821_v17 = vld [vmem:[%s1665_s5 + $0xb8] sm:$0xff] }
 0x111   : > { %v1168_v13 = vpack.c.bf16 %v819_v11, %v818_v10 }
 0x112   : > { %v1125_v19 = vpop.f32.mrb[18].mxu0 }
 0x113   : > { %v654_v20 = vmax.f32 %v650_v12, %v1125_v19  ;;  %v570_v21 = vpop.f32.mrb[19].mxu0  ;;  %v1166_v12 = vpack.c.bf16 %v801_v9, %v800_v8 }
 0x114   : > { %v653_v22 = vmax.f32 %v649_v14, %v570_v21  ;;  %v802_v14 = vld [vmem:[%s1665_s5 + $0x20] sm:$0xff]  ;;  %v805_v21 = vld [vmem:[%s1665_s5 + $0x38] sm:$0xff] }
 0x116   : > { %v1128_v23 = vpop.f32.mrb[20].mxu0 }
 0x117   : > { %v656_v24 = vmax.f32 %v652_v16, %v1128_v23  ;;  %v580_v25 = vpop.f32.mrb[21].mxu0  ;;  %v820_v16 = vld [vmem:[%s1665_s5 + $0xb0] sm:$0xff]  ;;  %v823_v23 = vld [vmem:[%s1665_s5 + $0xc8] sm:$0xff] }
 0x118   : > { %v655_v26 = vmax.f32 %v651_v18, %v580_v25  ;;  %v1170_v18 = vpack.c.bf16 %v803_v15, %v802_v14  ;;  %v1172_v19 = vpack.c.bf16 %v821_v17, %v820_v16 }
 0x11a   : > { %v1131_v27 = vpop.f32.mrb[22].mxu0 }
 0x11b   : > { %v658_v28 = vmax.f32 %v654_v20, %v1131_v27  ;;  %v590_v29 = vpop.f32.mrb[23].mxu0  ;;  %v804_v20 = vld [vmem:[%s1665_s5 + $0x30] sm:$0xff]  ;;  %v807_v27 = vld [vmem:[%s1665_s5 + $0x48] sm:$0xff] }
 0x11c   : > { %v657_v30 = vmax.f32 %v653_v22, %v590_v29  ;;  %v822_v22 = vld [vmem:[%s1665_s5 + $0xc0] sm:$0xff]  ;;  %v825_v29 = vld [vmem:[%s1665_s5 + $0xd8] sm:$0xff] }
 0x11d   : > { %v662_v31 = vmax.f32 %v658_v28, %v1137_v47  ;;  %v1176_v25 = vpack.c.bf16 %v823_v23, %v822_v22  ;;  %v824_v28 = vld [vmem:[%s1665_s5 + $0xd0] sm:$0xff] }
 0x11e   : > { %v1134_v32 = vpop.f32.mrb[24].mxu0  ;;  %v661_v33 = vmax.f32 %v657_v30, %v610_v48  ;;  %v1156_v48 = vpack.c.bf16 %v692_v45, %v690_v44  ;;  %v812_v44 = vld [vmem:[%s1665_s5 + $0x70] sm:$0xff]  ;;  %v813_v45 = vld [vmem:[%s1665_s5 + $0x78] sm:$0xff] }
 0x11f   : > { %v660_v34 = vmax.f32 %v656_v24, %v1134_v32  ;;  %v666_v35 = vmax.f32 %v662_v31, %v1143_v57  ;;  %v600_v36 = vpop.f32.mrb[25].mxu0  ;;  %v1174_v24 = vpack.c.bf16 %v805_v21, %v804_v20  ;;  %v1180_v31 = vpack.c.bf16 %v825_v29, %v824_v28  ;;  %v808_v32 = vld [vmem:[%s1665_s5 + $0x50] sm:$0xff] }
 0x120   : > { %v659_v37 = vmax.f32 %v655_v26, %v600_v36  ;;  %v665_v38 = vmax.f32 %v661_v33, %v630_v58  ;;  %1157 = vmatprep.subr.bf16.mxu1 %v1156_v48  ;;  %v1160_v58 = vpack.c.bf16 %v815_v56, %v814_v55  ;;  %v806_v26 = vld [vmem:[%s1665_s5 + $0x40] sm:$0xff]  ;;  %v809_v33 = vld [vmem:[%s1665_s5 + $0x58] sm:$0xff]  ;;  %v827_v36 = vld [vmem:[%s1665_s5 + $0xe8] sm:$0xff]  ;;  %v1190_v46 = vpack.c.bf16 %v813_v45, %v812_v44 }
 0x121   : > { %v664_v39 = vmax.f32 %v660_v34, %v1140_v51  ;;  %1159 = vmatpush1.bf16.msra.mxu1 %v1158_v50  ;;  %v1178_v30 = vpack.c.bf16 %v807_v27, %v806_v26  ;;  %v1182_v34 = vpack.c.bf16 %v809_v33, %v808_v32  ;;  %v768_v50 = vld [vmem:[%s1663_s3] sm:$0x3] }
 0x122   : > { %v663_v40 = vmax.f32 %v659_v37, %v620_v52  ;;  %v668_v41 = vmax.f32 %v665_v38, %v666_v35  ;;  %1161 = vmatprep.subr.bf16.mxu1 %v1160_v58  ;;  %v826_v35 = vld [vmem:[%s1665_s5 + $0xe0] sm:$0xff] }
 0x123   : > { %v1184_v37 = vpack.c.bf16 %v827_v36, %v826_v35  ;;  %v810_v38 = vld [vmem:[%s1665_s5 + $0x60] sm:$0xff] }
 0x124   : > { %v667_v42 = vmax.f32 %v663_v40, %v664_v39  ;;  %v811_v39 = vld [vmem:[%s1665_s5 + $0x68] sm:$0xff] }
 0x125   : > { %v1186_v40 = vpack.c.bf16 %v811_v39, %v810_v38 }
 0x126   : > { %v669_v43 = vmax.f32 %v667_v42, %v668_v41  ;;  %v828_v41 = vld [vmem:[%s1665_s5 + $0xf0] sm:$0xff]  ;;  %v829_v42 = vld [vmem:[%s1665_s5 + $0xf8] sm:$0xff] }
 0x128   : > { %v670_v47 = vrot.slane %v669_v43, 4 }
 0x12a   : > { %v671_v51 = vmax.f32 %v669_v43, %v670_v47  ;;  %v1188_v43 = vpack.c.bf16 %v829_v42, %v828_v41  ;;  %v770_v47 = vlaneseq }
 0x12c   : > { %v672_v52 = vrot.slane %v671_v51, 2  ;;  %v771_v48 = vshrl.u32 %v770_v47, 7 }
 0x12e   : > { %v673_v53 = vmax.f32 %v671_v51, %v672_v52  ;;  %v772_v49 = vsub.s32 0, %v771_v48  ;;  %v776_v51 = vsub.s32 1, %v771_v48  ;;  %v782_v52 = vld [vmem:[%s1664_s4] sm:$0x3] }
 0x130   : > { %v674_v57 = vrot.slane %v673_v53, 1  ;;  %v777_v54 = vrot.slane %v768_v50, %v776_v51  ;;  %v787_v55 = vrot.slane %v782_v52, %v772_v49 }
 0x132   : > { %v675_v59 = vmax.f32 %v673_v53, %v674_v57  ;;  %v773_v53 = vrot.slane %v768_v50, %v772_v49  ;;  %v791_v57 = vrot.slane %v782_v52, %v776_v51 }
 0x134   : > { %682 = vrot.lane.b32.xlu1 %v675_v59, %s1306_s20  ;;  %676 = vrot.lane.b32.xlu0 %v675_v59, %s1307_s21  ;;  %s1010_s20 = sshll.u32 %s1371_s28, 4  ;;  %s270_s21 = scalar_lea.vmem [#allocation2], %s269_s17 }
 0x135   : > { %s1618_s8 = scalar_lea.hbm %s1667_s7, %s1010_s20  ;;  %s1309_s28 = smov [#allocation2]  }
 0x136   : > { %s1245_s14 = sshll.u32 %s1309_s28, 4  ;;  %s1246_s14 = int_to_ptr.vmem [resolvable:$false] %s1245_s14 }
 0x137   : > { %s1247_s15 = scalar_lea.vmem %s1246_s14, 32 }
 0x138   : > { %679 = vrot.lane.b32.xlu0 %v675_v59, %s1308_s22  ;;  %s915_s22 = sshll.u32 %s270_s21, 4  ;;  %s1620_s22 = int_to_ptr.vmem [resolvable:$true] %s915_s22 }
 0x139   : > { %s1241_s13 = scalar_lea.vmem %s1620_s22, 16  ;;  %p1248_p0 = scmp.lt.s32.totalorder %s1620_s22, %s1246_s14 }
 0x13a   : > { %p1242_p11 = scmp.ne.s32.totalorder %s1620_s22, %s1241_s13  ;;  %p1249_p1 = scmp.lt.s32.totalorder %s1247_s15, %s1241_s13 }
 0x13c   : > { %p1243_p12 = pnand %p1242_p11, %p1388_p5  ;;  %p1250_p2 = por %p1249_p1, %p1248_p0 }
 0x13e   : > { %p1244_p13 = pneg %p1243_p12 }
 0x140   : > { %p1251_p3 = pnand %p1250_p2, %p1244_p13 }
 0x1a6   : > { %v677_v60 = vpop.permute.xlu0 %676  ;;  %v683_v4 = vpop.permute.xlu1 %682 }
 0x1a7   : > { %v678_v61 = vmax.f32 %v675_v59, %v677_v60 }
 0x1aa   : > { %v680_v0 = vpop.permute.xlu0 %679 }
 0x1ab   : > { %v681_v3 = vmax.f32 %v678_v61, %v680_v0 }
 0x1ad   : > { %v684_v6 = vmax.f32 %v681_v3, %v683_v4 }
 0x1af   : > { %1009 = vmatmul.mubr.msk.f32.vlgmr.msra.gmra.mrb[6].mxu1 %vm693_vm2, %v684_v6 }
 0x1b0   : > { %1163 = vmatpush3.bf16.msra.mxu1 %v1162_v5 }
 0x1b1   : > { %1165 = vmatprep.subr.bf16.mxu1 %v1164_v7 }
 0x1b4   : > { %1167 = vmatpush3.bf16.msra.mxu1 %v1166_v12 }
 0x1b5   : > { %1169 = vmatprep.subr.bf16.mxu1 %v1168_v13 }
 0x1b8   : > { %1171 = vmatpush3.bf16.msra.mxu1 %v1170_v18 }
 0x1b9   : > { %1173 = vmatprep.subr.bf16.mxu1 %v1172_v19 }
 0x1bc   : > { %1175 = vmatpush3.bf16.msra.mxu1 %v1174_v24 }
 0x1bd   : > { %1177 = vmatprep.subr.bf16.mxu1 %v1176_v25 }
 0x1c0   : > { %1179 = vmatpush3.bf16.msra.mxu1 %v1178_v30 }
 0x1c1   : > { %1181 = vmatprep.subr.bf16.mxu1 %v1180_v31 }
 0x1c4   : > { %1183 = vmatpush3.bf16.msra.mxu1 %v1182_v34 }
 0x1c5   : > { %1185 = vmatprep.subr.bf16.mxu1 %v1184_v37 }
 0x1c8   : > { %1187 = vmatpush3.bf16.msra.mxu1 %v1186_v40 }
 0x1c9   : > { %1189 = vmatprep.subr.bf16.mxu1 %v1188_v43 }
 0x1cc   : > { %1191 = vmatpush3.bf16.msra.mxu1 %v1190_v46 }
 0x282   : > { %v763_v56 = vpop.f32.mrb[6].mxu1 }
 0x283   : > { %v780_v58 = vmul.f32 %v773_v53, %v763_v56  ;;  %v765_v59 = vpop.f32.mrb[7].mxu1 }
 0x284   : > { %v781_v60 = vmul.f32 %v777_v54, %v765_v59 }
 0x285   : > { %v794_v61 = vadd.f32 %v787_v55, %v780_v58 }
 0x286   : > { %v795_v62 = vadd.f32 %v791_v57, %v781_v60 }
 0x287   : > { %v796_v0 = vmax.f32 %v794_v61, 0.0 }
 0x288   : > { %v797_v63 = vmax.f32 %v795_v62, 0.0 }
 0x28a   : > { %895 = vmatprep.mubr.f32.mxu1 %v797_v63 }
 0x28b   : > { %896 = vmatmul.mubr.f32.vlgmr.msra.gmra.mrb[8].mxu1 %v796_v0 }
 0x35e   : > { %v1083_v1 = vpop.f32.mrb[8].mxu1 }
 0x35f   : > { %v1084_v3 = vpop.f32.mrb[9].mxu1 }
 0x360   : > { %v1085_v4 = vadd.f32 %v1084_v3, %v1083_v1 }
 0x362   : > { %v898_v5 = vadd.f32 %v1085_v4, %v830_v2 }
 0x364   : > { %901 = vst [vmem:[%s270_s21] sm:$0x1] %v898_v5 }
 0x365   : > { %1254 = shalt.err (!%p1251_p3)
}
 0x366   : > { %s1255_s16 = scalar_lea.hbm %s1618_s8, 16  ;;  %s1259_s19 = scalar_lea.hbm %s1667_s7, 32 }
 0x367   : > { %p1256_p4 = scmp.ne.s32.totalorder %s1618_s8, %s1255_s16  ;;  %p1260_p9 = scmp.lt.u32.totalorder %s1618_s8, %s1667_s7 }
 0x368   : > { %p1261_p10 = scmp.lt.u32.totalorder %s1259_s19, %s1255_s16  ;;  %p1263_p12 = scmp.lt.u32.totalorder %s1255_s16, %s1618_s8 }
 0x369   : > { %p1257_p7 = pnand %p1256_p4, %p1388_p5 }
 0x36a   : > { %p1262_p11 = por %p1261_p10, %p1260_p9 }
 0x36b   : > { %p1258_p8 = pneg %p1257_p7 }
 0x36c   : > { %p1264_p13 = por %p1263_p12, %p1262_p11 }
 0x36e   : > { %p1265_p0 = pnand %p1264_p13, %p1258_p8 }
 0x370   : > { %1268 = shalt.err (!%p1265_p0)
}
 0x371   : > { %1198 = dma.vmem_to_hbm [thread:$0]  (%p1388_p5), %s1620_s22, 16, %s1618_s8, %s903_s9  }
 0x372 PF: > { %p1204_p1 = scmp.ge.s32.totalorder %s1303_s27, 2  ;;  %s927_s23 = sand.u32 1, %s1291_s24  }
 0x373   : > { %s928_s29 = scalar_lea.sflag [#allocation3], %s927_s23 }
 0x374   : > { %p1201_p2 = pnand %p1204_p1, %p1392_p6 }
 0x376   : > { %1286 = dma.done.wait (!%p1201_p2), %s928_s29, 16  }
 0x377   : > { %1288 = vsyncadd (!%p1201_p2), %s928_s29, 4294967280  ;;  %p17_p3 = scmp.ge.s32.totalorder %s1375_s30, 4   ;;  %s1670_s24 = smov %s1295_s25 }
 0x378   : > { %s1671_s25 = smov %s1299_s26  ;;  %s1672_s26 = smov %s1386_s10 }
 0x379   : > { %s1673_s27 = smov %s1375_s30  ;;  %19 = sbr.rel (!%p17_p3) target bundleno = 3 (0x3), region = 83 }
 0x380   :  { %932 = vsyncpa [#allocation3], 1 }
 0x381   :  { %934 = vsyncpa [#allocation3 + $0x1], 1 }

</bundles_post_ra>
